<compile_context>
chip_gen: v7x
topology: tpu7x:2x2x1
jax: 0.10.0
libtpu: 0.0.40
codegen_flags: <defaults>
</compile_context>

<pallas_src>
import functools

import jax
import jax.numpy as jnp
import numpy as np
from jax import lax
from jax.experimental import pallas as pl
from jax.experimental.pallas import tpu as pltpu


def _round_up(x, m):
    return ((x + m - 1) // m) * m


# ---------------------------------------------------------------------------
# Kernel bodies
# ---------------------------------------------------------------------------

def _rhs_terms(bac, S, cetas, vs, ks, D, S0, approx_recip):
    """Chemostat RHS on lane-dense tiles. bac: (n, Bb), S: (1, Bb), params (n, 1)."""
    # NOTE: no epsilon in the denominator -> exact module semantics.  If the
    # integrator can drive S toward -Ks, add a clamp here.
    denom = S + ks                                      # (n, Bb)
    if approx_recip:
        mm = vs * S * pl.reciprocal(denom, approx=True)  # EUP slot
    else:
        mm = vs * S / denom
    xfis = mm * bac                                     # (n, Bb)
    bac_d = -D * bac + xfis * cetas
    sub_d = D * (S0 - S) - jnp.sum(xfis, axis=0, keepdims=True)
    return bac_d, sub_d


def _chemostat_rhs_kernel(sc_ref, cetas_ref, vs_ref, ks_ref, x_ref, out_ref, *,
                          n_species, approx_recip):
    """Single RHS evaluation on one lane-dense batch block.

    sc_ref    : (2,)          SMEM  -> [D, S0]
    cetas/vs/ks_ref : (n, 1)  VMEM
    x_ref     : (n+1, Bb)     VMEM  -> rows 0..n-1 bacteria, row n substrate
    out_ref   : (n+1, Bb)     VMEM  -> rows 0..n-1 bacDerivs, row n subDeriv
    """
    n = n_species
    D = sc_ref[0]
    S0 = sc_ref[1]
    bac = x_ref[:n, :]
    S = x_ref[n:n + 1, :]
    bac_d, sub_d = _rhs_terms(bac, S, cetas_ref[...], vs_ref[...], ks_ref[...],
                              D, S0, approx_recip)
    out_ref[:n, :] = bac_d
    out_ref[n:n + 1, :] = sub_d


def _chemostat_euler_kernel(sc_ref, cetas_ref, vs_ref, ks_ref, x_ref, out_ref,
                            state_ref, *, n_species, n_steps, approx_recip):
    """Fused explicit-Euler integration: state stays in VMEM for all steps.

    sc_ref    : (3,)          SMEM  -> [D, S0, dt]
    state_ref : (n+1, Bb)     VMEM scratch (resident state)
    """
    n = n_species
    D = sc_ref[0]
    S0 = sc_ref[1]
    dt = sc_ref[2]
    cetas = cetas_ref[...]
    vs = vs_ref[...]
    ks = ks_ref[...]

    state_ref[...] = x_ref[...]

    def body(_, carry):
        bac = state_ref[:n, :]
        S = state_ref[n:n + 1, :]
        bac_d, sub_d = _rhs_terms(bac, S, cetas, vs, ks, D, S0, approx_recip)
        state_ref[:n, :] = bac + dt * bac_d
        state_ref[n:n + 1, :] = S + dt * sub_d
        return carry

    lax.fori_loop(0, n_steps, body, 0)
    out_ref[...] = state_ref[...]


# ---------------------------------------------------------------------------
# pallas_call builders / block planning
# ---------------------------------------------------------------------------

def _vmem_budget_bytes():
    try:
        cap = pltpu.get_tpu_info().vmem_capacity_bytes
    except Exception:
        cap = 64 << 20  # conservative (v7x physical)
    return cap // 4      # headroom for double-buffering + scratch + compiler use


def _plan_blocks(n, B, max_block_b):
    """Pick (B_pad, block_b, num_blocks) for lane-dense batch tiling."""
    B_pad0 = _round_up(max(B, 1), 128)
    # Double-buffered footprint per lane: (in + out) blocks, f32, x2 buffers.
    per_lane_bytes = 2 * 2 * (n + 1) * 4
    lanes_fit = max(128, (_vmem_budget_bytes() // per_lane_bytes) // 128 * 128)
    block_b = min(B_pad0, lanes_fit, _round_up(max(max_block_b, 128), 128))
    # Force >= 2 blocks whenever there is enough work so dimension_semantics
    # ("parallel",) can shard across the two v7x TensorCores (harmless elsewhere).
    if B_pad0 >= 256:
        block_b = min(block_b, _round_up(-(-B_pad0 // 2), 128))
    B_pad = _round_up(B_pad0, block_b)
    return B_pad, block_b, B_pad // block_b


def _build_call(kernel, n, B_pad, block_b, num_blocks, scratch_shapes=()):
    out_shape = jax.ShapeDtypeStruct((n + 1, B_pad), jnp.float32)
    smem_spec = pl.BlockSpec(memory_space=pltpu.MemorySpace.SMEM)
    vmem = pltpu.MemorySpace.VMEM

    if num_blocks == 1:
        # Single block: skip grid / pipelining machinery entirely.
        return pl.pallas_call(
            kernel,
            out_shape=out_shape,
            in_specs=[smem_spec,
                      pl.BlockSpec(memory_space=vmem),
                      pl.BlockSpec(memory_space=vmem),
                      pl.BlockSpec(memory_space=vmem),
                      pl.BlockSpec(memory_space=vmem)],
            out_specs=pl.BlockSpec(memory_space=vmem),
            scratch_shapes=list(scratch_shapes),
        )

    param_spec = pl.BlockSpec((n, 1), lambda i: (0, 0))      # constant, never re-DMA'd
    return pl.pallas_call(
        kernel,
        out_shape=out_shape,
        grid_spec=pltpu.PrefetchScalarGridSpec(
            num_scalar_prefetch=0,
            grid=(num_blocks,),
            in_specs=[smem_spec,
                      param_spec, param_spec, param_spec,
                      pl.BlockSpec((n + 1, block_b), lambda i: (0, i))],
            out_specs=pl.BlockSpec((n + 1, block_b), lambda i: (0, i)),
            scratch_shapes=list(scratch_shapes)),
        compiler_params=pltpu.CompilerParams(
            dimension_semantics=("parallel",)),               # megacore-shardable
    )


# ---------------------------------------------------------------------------
# Public wrappers
# ---------------------------------------------------------------------------

def chemostat_rhs(xT, cetas, vs, ks, *, D, S0, approx_recip=False,
                  max_block_b=65536):
    """Zero-copy-layout batched RHS.

    xT : (n+1, B) float32 ensemble, rows = [b_1..b_n, S], columns = members.
    cetas, vs, ks : (n,) parameter vectors.
    returns : (n+1, B) float32 derivatives, rows = [bacDerivs, subDeriv].
    """
    n = int(cetas.shape[0])
    rows, B = xT.shape
    assert rows == n + 1 and vs.shape == (n,) and ks.shape == (n,)

    B_pad, block_b, num_blocks = _plan_blocks(n, B, max_block_b)
    xT_p = xT.astype(jnp.float32)
    if B_pad != B:
        xT_p = jnp.pad(xT_p, ((0, 0), (0, B_pad - B)))

    scalars = jnp.array([D, S0], jnp.float32)
    kernel = functools.partial(_chemostat_rhs_kernel, n_species=n,
                               approx_recip=approx_recip)
    call = _build_call(kernel, n, B_pad, block_b, num_blocks)
    out = call(scalars,
               cetas.astype(jnp.float32).reshape(n, 1),
               vs.astype(jnp.float32).reshape(n, 1),
               ks.astype(jnp.float32).reshape(n, 1),
               xT_p)
    return out[:, :B]


def chemostat_integrate_euler(xT, cetas, vs, ks, *, D, S0, dt, n_steps,
                              approx_recip=False, max_block_b=65536):
    """Fused explicit-Euler integration of the chemostat ODE.

    Keeps each (n+1, block_b) state tile resident in VMEM across all n_steps
    RHS evaluations; HBM is touched once on the way in and once on the way out.
    """
    n = int(cetas.shape[0])
    rows, B = xT.shape
    assert rows == n + 1

    B_pad, block_b, num_blocks = _plan_blocks(n, B, max_block_b)
    xT_p = xT.astype(jnp.float32)
    if B_pad != B:
        xT_p = jnp.pad(xT_p, ((0, 0), (0, B_pad - B)))

    scalars = jnp.array([D, S0, dt], jnp.float32)
    kernel = functools.partial(_chemostat_euler_kernel, n_species=n,
                               n_steps=int(n_steps), approx_recip=approx_recip)
    scratch = [pltpu.VMEM((n + 1, block_b), jnp.float32)]
    call = _build_call(kernel, n, B_pad, block_b, num_blocks, scratch)
    out = call(scalars,
               cetas.astype(jnp.float32).reshape(n, 1),
               vs.astype(jnp.float32).reshape(n, 1),
               ks.astype(jnp.float32).reshape(n, 1),
               xT_p)
    return out[:, :B]


def chemostat_rhs_batched(x_batch, theta, *, n_species, D, S0,
                          approx_recip=False, max_block_b=65536):
    """Convenience wrapper for (B, n+1) row-major ensembles (adds a transpose;
    prefer `chemostat_rhs` with a persistent (n+1, B) layout in hot loops)."""
    n = n_species
    assert theta.shape == (3 * n,)
    cetas, vs, ks = theta[:n], theta[n:2 * n], theta[-n:]
    out = chemostat_rhs(x_batch.astype(jnp.float32).T, cetas, vs, ks,
                        D=D, S0=S0, approx_recip=approx_recip,
                        max_block_b=max_block_b)
    return out.T


def chemostat_forward(x, theta, *, n_species, D, S0, approx_recip=False):
    """Single-state forward, matching Chemostat.forward(t, x) (t unused)."""
    out = chemostat_rhs_batched(x.reshape(1, n_species + 1), theta,
                                n_species=n_species, D=D, S0=S0,
                                approx_recip=approx_recip)
    return out[0]


# ---------------------------------------------------------------------------
# Pure numpy references + self-test
# ---------------------------------------------------------------------------

def _reference_rhs(xb, theta, n, D, S0):
    cetas = theta[:n]
    vs = theta[n:2 * n]
    ks = theta[-n:]
    bac = xb[:, :n]
    S = xb[:, n:n + 1]
    xfis = (vs * S / (S + ks)) * bac
    bac_d = -D * bac + xfis * cetas
    sub_d = D * (S0 - S) - xfis.sum(axis=1, keepdims=True)
    return np.concatenate([bac_d, sub_d], axis=1)


def _reference_euler(xb, theta, n, D, S0, dt, n_steps):
    state = xb.astype(np.float32).copy()
    for _ in range(n_steps):
        state = state + np.float32(dt) * _reference_rhs(
            state, theta, n, D, S0).astype(np.float32)
    return state


if __name__ == "__main__":
    n_species = 8
    D = 0.5
    S0 = 2.0

    key = jax.random.PRNGKey(0)
    kx, kt, kb = jax.random.split(key, 3)
    # Positive state / parameters (concentrations & MM constants are positive).
    x = jax.random.uniform(kx, (n_species + 1,), jnp.float32, 0.1, 1.0)
    theta = jax.random.uniform(kt, (3 * n_species,), jnp.float32, 0.1, 1.0)
    x_batch = jax.random.uniform(kb, (512, n_species + 1), jnp.float32, 0.1, 1.0)

    theta_np = np.asarray(theta)

    # 1) Single-state RHS (grid-less path), exact divide -> tight tolerance.
    out1 = jax.block_until_ready(
        chemostat_forward(x, theta, n_species=n_species, D=D, S0=S0))
    ref1 = _reference_rhs(np.asarray(x)[None, :], theta_np, n_species, D, S0)[0]
    np.testing.assert_allclose(np.asarray(out1), ref1, rtol=1e-5, atol=1e-5)

    # 2) Batched RHS (grid path, >=2 parallel blocks), exact divide default.
    out_b = jax.block_until_ready(
        chemostat_rhs_batched(x_batch, theta, n_species=n_species, D=D, S0=S0,
                              max_block_b=256))
    ref_b = _reference_rhs(np.asarray(x_batch), theta_np, n_species, D, S0)
    np.testing.assert_allclose(np.asarray(out_b), ref_b, rtol=1e-5, atol=1e-5)

    # 3) Fused in-kernel Euler integration (state resident in VMEM scratch).
    cetas, vs, ks = theta[:n_species], theta[n_species:2 * n_species], theta[-n_species:]
    xT = x_batch.T
    n_steps, dt = 16, 0.01
    out_e = jax.block_until_ready(
        chemostat_integrate_euler(xT, cetas, vs, ks, D=D, S0=S0, dt=dt,
                                  n_steps=n_steps, max_block_b=256))
    ref_e = _reference_euler(np.asarray(x_batch), theta_np, n_species, D, S0,
                             dt, n_steps).T
    np.testing.assert_allclose(np.asarray(out_e), ref_e, rtol=1e-4, atol=1e-5)

    print("KERNEL_OK")
</pallas_src>

<mosaic_0001>
module attributes {stable_mosaic.version = 11 : i64} {
  func.func @_chemostat_rhs_kernel(%arg0: memref<2xf32, #tpu.memory_space<smem>>, %arg1: memref<8x1xf32, #tpu.memory_space<vmem>>, %arg2: memref<8x1xf32, #tpu.memory_space<vmem>>, %arg3: memref<8x1xf32, #tpu.memory_space<vmem>>, %arg4: memref<9x128xf32, #tpu.memory_space<vmem>>, %arg5: memref<9x128xf32, #tpu.memory_space<vmem>>) attributes {dimension_semantics = [], scalar_prefetch = 0 : i64, scratch_operands = 0 : i64, tpu.core_type = #tpu.core_type<tc>} {
    %c0 = arith.constant 0 : index
    %0 = memref.load %arg0[%c0] : memref<2xf32, #tpu.memory_space<smem>>
    %c1 = arith.constant 1 : index
    %1 = memref.load %arg0[%c1] : memref<2xf32, #tpu.memory_space<smem>>
    %c0_0 = arith.constant 0 : index
    %c0_1 = arith.constant 0 : index
    %2 = vector.load %arg4[%c0_0, %c0_1] : memref<9x128xf32, #tpu.memory_space<vmem>>, vector<8x128xf32>
    %c8 = arith.constant 8 : index
    %c0_2 = arith.constant 0 : index
    %3 = vector.load %arg4[%c8, %c0_2] : memref<9x128xf32, #tpu.memory_space<vmem>>, vector<1x128xf32>
    %c0_3 = arith.constant 0 : index
    %c0_4 = arith.constant 0 : index
    %4 = vector.load %arg1[%c0_3, %c0_4] : memref<8x1xf32, #tpu.memory_space<vmem>>, vector<8x1xf32>
    %c0_5 = arith.constant 0 : index
    %c0_6 = arith.constant 0 : index
    %5 = vector.load %arg2[%c0_5, %c0_6] : memref<8x1xf32, #tpu.memory_space<vmem>>, vector<8x1xf32>
    %c0_7 = arith.constant 0 : index
    %c0_8 = arith.constant 0 : index
    %6 = vector.load %arg3[%c0_7, %c0_8] : memref<8x1xf32, #tpu.memory_space<vmem>>, vector<8x1xf32>
    %7 = vector.broadcast %3 : vector<1x128xf32> to vector<8x128xf32>
    %8 = vector.broadcast %6 : vector<8x1xf32> to vector<8x128xf32>
    %9 = arith.addf %7, %8 : vector<8x128xf32>
    %10 = vector.broadcast %5 : vector<8x1xf32> to vector<8x128xf32>
    %11 = vector.broadcast %3 : vector<1x128xf32> to vector<8x128xf32>
    %12 = arith.mulf %10, %11 : vector<8x128xf32>
    %13 = arith.divf %12, %9 : vector<8x128xf32>
    %14 = arith.mulf %13, %2 : vector<8x128xf32>
    %cst = arith.constant 0.000000e+00 : f32
    %15 = arith.subf %cst, %0 : f32
    %16 = vector.broadcast %15 : f32 to vector<8x128xf32>
    %17 = arith.mulf %16, %2 : vector<8x128xf32>
    %18 = vector.broadcast %4 : vector<8x1xf32> to vector<8x128xf32>
    %19 = arith.mulf %14, %18 : vector<8x128xf32>
    %20 = arith.addf %17, %19 : vector<8x128xf32>
    %21 = vector.broadcast %1 : f32 to vector<1x128xf32>
    %22 = arith.subf %21, %3 : vector<1x128xf32>
    %23 = vector.broadcast %0 : f32 to vector<1x128xf32>
    %24 = arith.mulf %23, %22 : vector<1x128xf32>
    %cst_9 = arith.constant dense<0.000000e+00> : vector<128xf32>
    %25 = vector.multi_reduction <add>, %14, %cst_9 [0] : vector<8x128xf32> to vector<128xf32>
    %26 = vector.shape_cast %25 : vector<128xf32> to vector<1x128xf32>
    %27 = arith.subf %24, %26 : vector<1x128xf32>
    %c0_10 = arith.constant 0 : index
    %c0_11 = arith.constant 0 : index
    %28 = vector.load %arg5[%c0_10, %c0_11] : memref<9x128xf32, #tpu.memory_space<vmem>>, vector<8x128xf32>
    tpu.vector_store %arg5[%c0_10, %c0_11], %20 {strides = array<i32>} : memref<9x128xf32, #tpu.memory_space<vmem>>, vector<8x128xf32>,
    %c8_12 = arith.constant 8 : index
    %c0_13 = arith.constant 0 : index
    %29 = vector.load %arg5[%c8_12, %c0_13] : memref<9x128xf32, #tpu.memory_space<vmem>>, vector<1x128xf32>
    tpu.vector_store %arg5[%c8_12, %c0_13], %27 {strides = array<i32>} : memref<9x128xf32, #tpu.memory_space<vmem>>, vector<1x128xf32>,
    return
  }
}

</mosaic_0001>

<bundles_post_ra>
// kernel: tpu_custom_call.1
= control target key start
LH: loop header
LB: loop body
LE: loop exit
PB: predicated region body
PF: predicated region fallthrough
CT: control target
= control target key end

     0   :  { %10 = vsyncpa [#allocation4], 0  ;;  %s213_s0 = inlined_call_operand.vmem [shape: f32[2], index: 0, kind: input, shape index: {}]   ;;  %s214_s1 = inlined_call_operand.vmem [shape: f32[8,1], index: 1, kind: input, shape index: {}]   ;;  %s215_s2 = inlined_call_operand.vmem [shape: f32[8,1], index: 2, kind: input, shape index: {}]   ;;  %s216_s3 = inlined_call_operand.vmem [shape: f32[8,1], index: 3, kind: input, shape index: {}]   ;;  %s217_s4 = inlined_call_operand.vmem [shape: f32[9,128], index: 4, kind: input, shape index: {}]   ;;  %s218_s5 = inlined_call_operand.hbm [shape: f32[9,128], index: 5, kind: output, shape index: {}]  }
   0x1   :  { %11 = vsyncpa [#allocation3], 0  ;;  %s18_s20 = sshll.u32 %s213_s0, 4  ;;  %s19_s20 = int_to_ptr.vmem [resolvable:$true] %s18_s20 }
   0x2   :  { %s110_s21 = scalar_lea.vmem %s19_s20, 16  ;;  %p115_p1 = scmp.lt.s32.totalorder %s19_s20, %s19_s20 }
   0x3   :  { %p111_p0 = scmp.ne.s32.totalorder %s19_s20, %s110_s21  ;;  %p116_p2 = scmp.lt.s32.totalorder %s110_s21, %s110_s21 }
   0x5   :  { %p117_p3 = por %p116_p2, %p115_p1 }
   0x7   :  { %p118_p4 = pnand %p117_p3, %p111_p0 }
   0x9   :  { %121 = shalt.err (!%p118_p4)
}
   0xa   :  { %s148_s22 = smov [#allocation2]  }
   0xb   :  { %21 = dma.vmem_to_smem %s19_s20, 16, %s148_s22, [#allocation4]  }
   0xc   :  { %144 = dma.done.wait [#allocation4], 16  }
   0xd   :  { %145 = vsyncadd [#allocation4], 4294967280 }
   0xe   :  { %33 = sfence }
   0xf   :  { %v40_v0 = vld [vmem:[%s216_s3] sm:$0xff]  ;;  %v149_v2 = vmov 0   ;;  %v41_v4 = vlaneseq  ;;  %v37_v7 = vld [vmem:[%s217_s4 + $0x8] sm:$0x1]  ;;  %s100_s30 = sld [smem:[#allocation2 + $0x1]]  ;;  %s150_s7 = smov [#allocation5]  }
  0x10   :  { %v38_v1 = vld [vmem:[%s214_s1] sm:$0xff]  ;;  %106 = vset.pattern.permute.xlu0 %v149_v2  ;;  %107 = vset.pattern.permute.xlu1 %v149_v2  ;;  %s34_s1 = sld [smem:[#allocation2]]  ;;  %s88_s8 = sshll.u32 %s150_s7, 4  ;;  %s89_s8 = int_to_ptr.vmem [resolvable:$true] %s88_s8 }
  0x11   :  { %47 = vperm.xlu0 %106, %v40_v0   ;;  %65 = vperm.xlu1 %107, %v38_v1   ;;  %v39_v3 = vld [vmem:[%s215_s2] sm:$0xff]  ;;  %v42_v5 = vshrl.u32 %v41_v4, 7  ;;  %p127_p6 = scmp.lt.s32.totalorder %s89_s8, %s89_s8 }
  0x12   :  { %v36_v14 = vld [vmem:[%s217_s4] sm:$0xff]  ;;  %s122_s4 = scalar_lea.vmem %s89_s8, 256 }
  0x13   :  { %v43_v6 = vsub.s32 0, %v42_v5  ;;  %p123_p5 = scmp.ne.s32.totalorder %s89_s8, %s122_s4  ;;  %p128_p7 = scmp.lt.s32.totalorder %s122_s4, %s122_s4 }
  0x15   :  { %53 = vperm.xlu0 %106, %v39_v3   ;;  %v44_v8 = vrot.slane %v37_v7, %v43_v6  ;;  %v70_v22 = vstv %s100_s30  ;;  %p129_p8 = por %p128_p7, %p127_p6 }
  0x16   :  { %s60_s3 = ssub.f32 0.0, %s34_s1  ;;  %v71_v25 = vsub.f32 %v70_v22, %v37_v7  ;;  %v72_v27 = vstv %s34_s1 }
  0x17   :  { %p130_p9 = pnand %p129_p8, %p123_p5 }
  0x18   :  { %v61_v15 = vstv %s60_s3  ;;  %v73_v29 = vmul.f32 %v72_v27, %v71_v25 }
  0x19   :  { %v62_v19 = vmul.f32 %v61_v15, %v36_v14 }
  0x90   :  { %v48_v9 = vpop.permute.xlu0 %47  ;;  %v66_v17 = vpop.permute.xlu1 %65 }
  0x91   :  { %v50_v10 = vadd.f32 %v48_v9, %v44_v8 }
  0x93   :  { %108 = vrcp.f32 %v50_v10 }
  0x94   :  { %v54_v11 = vpop.permute.xlu0 %53 }
  0x95   :  { %v56_v12 = vmul.f32 %v54_v11, %v44_v8 }
  0x9d   :  { %v109_v13 = vpop.eup %108 }
  0x9e   :  { %v58_v16 = vmul.f32 %v109_v13, %v56_v12 }
  0xa0   :  { %v59_v18 = vmul.f32 %v58_v16, %v36_v14 }
  0xa2   :  { %v74_v20 = vrot.slane %v59_v18, 4  ;;  %v68_v21 = vmul.f32 %v66_v17, %v59_v18 }
  0xa4   :  { %v75_v23 = vadd.f32 %v74_v20, %v59_v18  ;;  %v69_v24 = vadd.f32 %v68_v21, %v62_v19 }
  0xa6   :  { %v76_v26 = vrot.slane %v75_v23, 2  ;;  %81 = vst [vmem:[#allocation5] sm:$0xff] %v69_v24 }
  0xa8   :  { %v77_v28 = vadd.f32 %v76_v26, %v75_v23 }
  0xaa   :  { %v78_v30 = vrot.slane %v77_v28, 1 }
  0xac   :  { %v79_v31 = vadd.f32 %v78_v30, %v77_v28 }
  0xae   :  { %v80_v32 = vsub.f32 %v73_v29, %v79_v31 }
  0xb0   :  { %82 = vst [vmem:[#allocation5 + $0x8] sm:$0x1] %v80_v32 }
  0xb1   :  { %133 = shalt.err (!%p130_p9)
}
  0xb2   :  { %s134_s11 = scalar_lea.hbm %s218_s5, 256 }
  0xb3   :  { %p135_p10 = scmp.ne.s32.totalorder %s218_s5, %s134_s11  ;;  %p138_p11 = scmp.lt.u32.totalorder %s134_s11, %s218_s5 }
  0xb5   :  { %p140_p12 = pnand %p138_p11, %p135_p10 }
  0xb7   :  { %143 = shalt.err (!%p140_p12)
}
  0xb8   :  { %s151_s16 = smov 128   ;;  %s152_s17 = smov 8  }
  0xb9   :  { %94 = dma.vmem_to_hbm [thread:$0]  %s89_s8, 256, %s218_s5, [#allocation3], %s151_s16, %s151_s16, %s152_s17  }
  0xba   :  { %146 = dma.done.wait [#allocation3], 256  }
  0xbb   :  { %147 = vsyncadd [#allocation3], 4294967040 }
  0xbc   :  { %98 = vsyncpa [#allocation3], 1 }
  0xbd   :  { %99 = vsyncpa [#allocation4], 1 }

</bundles_post_ra>
